<compile_context>
chip_gen: v7x
topology: tpu7x:2x2x1
jax: 0.10.0
libtpu: 0.0.40
codegen_flags: <defaults>
</compile_context>

<pallas_src>
import functools

import numpy as np
import jax
import jax.numpy as jnp
from jax.experimental import pallas as pl
from jax.experimental.pallas import tpu as pltpu


def _round_up(x, m):
    return (x + m - 1) // m * m


def _fcn_kernel(x_ref, w1_ref, b1_ref, wh_ref, bh_ref, wo_ref, bo_ref, o_ref,
                *, hidden, num_mid_layers, sparse_tol):
    # Layer 1: (TB, nn_in) @ (nn_in, H)  -- bf16 operands, f32 accumulation.
    h = jnp.dot(x_ref[...].astype(jnp.bfloat16), w1_ref[...],
                preferred_element_type=jnp.float32) + b1_ref[...]
    h = jnp.maximum(h, 0.0)

    # Layers 2..5: packed weight slab (num_mid*H, H) / bias slab (num_mid, H).
    for i in range(num_mid_layers):
        w_i = wh_ref[pl.ds(i * hidden, hidden), :]          # static slice
        b_i = bh_ref[pl.ds(i, 1), :]
        h = jnp.dot(h.astype(jnp.bfloat16), w_i,
                    preferred_element_type=jnp.float32) + b_i
        h = jnp.maximum(h, 0.0)

    # Final Linear fused with the lower-triangle -> symmetric-matrix scatter:
    # wo[:, i*n+j] = W6[:, k(max(i,j), min(i,j))], bo likewise (padded to 128 lanes).
    full = jnp.dot(h.astype(jnp.bfloat16), wo_ref[...],
                   preferred_element_type=jnp.float32) + bo_ref[...]

    # Sparsity threshold (f32 VPU), lane-dense store.
    o_ref[...] = jnp.where(jnp.abs(full) < sparse_tol, 0.0, full)


def make_fcn(n, hidden, batch_size, sparse_tol=1e-5, diagonal_bias=None, seed=0):
    """Builds deterministic params and returns (params, forward_fn, reference_fn)."""
    assert diagonal_bias is None  # TODO(synk): 'exp'/constant diagonal_bias branches not implemented (default None)
    nn_in = n * n
    lower = n * (n + 1) // 2
    num_mid = 4                                # fcn2..fcn5
    out_pad = max(128, _round_up(nn_in, 128))  # lane-dense output slab

    # ---- deterministic torch-Linear-style init -----------------------------
    key = jax.random.PRNGKey(seed)
    dims = [(nn_in, hidden)] + [(hidden, hidden)] * num_mid + [(hidden, lower)]
    ws, bs = [], []
    for fan_in, fan_out in dims:
        key, kw, kb = jax.random.split(key, 3)
        bound = 1.0 / float(np.sqrt(fan_in))
        ws.append(jax.random.uniform(kw, (fan_in, fan_out), jnp.float32, -bound, bound))
        bs.append(jax.random.uniform(kb, (fan_out,), jnp.float32, -bound, bound))

    # ---- lower-triangle -> full-matrix gather index (row-major tril order) --
    rows_np, cols_np = np.tril_indices(n)
    k_of = np.zeros((n, n), np.int32)
    k_of[rows_np, cols_np] = np.arange(lower)
    k_of[cols_np, rows_np] = np.arange(lower)   # symmetric; diag kept once (= L + L^T - diag)
    gather_idx = jnp.asarray(k_of.reshape(-1))  # (n*n,)

    # ---- pack parameters for the kernel -------------------------------------
    w1_bf = ws[0].astype(jnp.bfloat16)                                    # (nn_in, H)
    b1 = bs[0].reshape(1, hidden)                                         # (1, H) f32
    wh_bf = jnp.concatenate(ws[1:1 + num_mid], axis=0).astype(jnp.bfloat16)  # (4H, H)
    bh = jnp.stack(bs[1:1 + num_mid], axis=0)                             # (4, H) f32
    w6_bf = ws[-1].astype(jnp.bfloat16)                                   # (H, L)
    b6 = bs[-1]                                                           # (L,) f32
    # Fuse fcn6 with the scatter: full = h @ w6[:, k] + b6[k], padded to out_pad lanes.
    wo_bf = jnp.zeros((hidden, out_pad), jnp.bfloat16).at[:, :nn_in].set(w6_bf[:, gather_idx])
    bo = jnp.zeros((1, out_pad), jnp.float32).at[:, :nn_in].set(b6[gather_idx])
    packed = (w1_bf, b1, wh_bf, bh, wo_bf, bo)

    # ---- batch tiling --------------------------------------------------------
    tb = min(256, _round_up(batch_size, 8))   # small enough for v7x's 64 MiB VMEM
    b_pad = _round_up(batch_size, tb)
    grid = (b_pad // tb,)

    kernel = functools.partial(_fcn_kernel, hidden=hidden,
                               num_mid_layers=num_mid, sparse_tol=sparse_tol)

    flops = 2 * b_pad * (nn_in * hidden + num_mid * hidden * hidden + hidden * out_pad)
    bytes_accessed = (b_pad * nn_in * 4 + b_pad * out_pad * 4 +
                      sum(int(np.prod(p.shape)) * p.dtype.itemsize for p in packed))
    cost = pl.CostEstimate(flops=flops, transcendentals=0,
                           bytes_accessed=bytes_accessed)

    param_specs = [pl.BlockSpec(p.shape, lambda i: (0, 0)) for p in packed]

    fcn_call = pl.pallas_call(
        kernel,
        out_shape=jax.ShapeDtypeStruct((b_pad, out_pad), jnp.float32),
        grid=grid,
        in_specs=[pl.BlockSpec((tb, nn_in), lambda i: (i, 0))] + param_specs,
        out_specs=pl.BlockSpec((tb, out_pad), lambda i: (i, 0)),
        compiler_params=pltpu.CompilerParams(
            dimension_semantics=("parallel",),
            vmem_limit_bytes=32 * 1024 * 1024),
        cost_estimate=cost,
    )

    @jax.jit
    def forward(x):
        xp = x if b_pad == batch_size else jnp.pad(x, ((0, b_pad - batch_size), (0, 0)))
        out = fcn_call(xp, *packed)
        return out[:batch_size, :nn_in].reshape(batch_size, n, n)

    # Pure-JAX reference mirroring the torch module (same bf16 matmul operands).
    rows_j = jnp.asarray(rows_np)
    cols_j = jnp.asarray(cols_np)
    eye = jnp.eye(n, dtype=jnp.float32)

    @jax.jit
    def reference(x):
        h = jnp.maximum(jnp.dot(x.astype(jnp.bfloat16), w1_bf,
                                preferred_element_type=jnp.float32) + b1, 0.0)
        for i in range(num_mid):
            h = jnp.maximum(
                jnp.dot(h.astype(jnp.bfloat16), wh_bf[i * hidden:(i + 1) * hidden, :],
                        preferred_element_type=jnp.float32) + bh[i:i + 1, :], 0.0)
        tri = jnp.dot(h.astype(jnp.bfloat16), w6_bf,
                      preferred_element_type=jnp.float32) + b6
        L = jnp.zeros((x.shape[0], n, n), jnp.float32).at[:, rows_j, cols_j].set(tri)
        diags = jnp.einsum('bii->bi', L)[..., None] * eye
        full = L + jnp.swapaxes(L, 1, 2) - diags
        return jnp.where(jnp.abs(full) < sparse_tol, 0.0, full)

    return packed, forward, reference


if __name__ == "__main__":
    # Small shapes consistent with the module's forward.
    n, hidden, batch = 5, 32, 8
    params, forward, reference = make_fcn(n=n, hidden=hidden, batch_size=batch)

    x = jax.random.normal(jax.random.PRNGKey(0), (batch, n * n), jnp.float32)

    out = forward(x)
    jax.block_until_ready(out)

    ref = reference(x)
    assert out.shape == (batch, n, n)
    assert jnp.allclose(out, ref, atol=1e-4, rtol=1e-4), "mismatch vs reference"

    print("KERNEL_OK")
</pallas_src>

<mosaic_0001>
module attributes {stable_mosaic.version = 11 : i64} {
  func.func @_fcn_kernel(%arg0: i32, %arg1: memref<8x25xf32, #tpu.memory_space<vmem>>, %arg2: memref<25x32xbf16, #tpu.memory_space<vmem>>, %arg3: memref<1x32xf32, #tpu.memory_space<vmem>>, %arg4: memref<128x32xbf16, #tpu.memory_space<vmem>>, %arg5: memref<4x32xf32, #tpu.memory_space<vmem>>, %arg6: memref<32x128xbf16, #tpu.memory_space<vmem>>, %arg7: memref<1x128xf32, #tpu.memory_space<vmem>>, %arg8: memref<8x128xf32, #tpu.memory_space<vmem>>) attributes {dimension_semantics = [#tpu.dimension_semantics<parallel>], iteration_bounds = array<i64: 1>, scalar_prefetch = 0 : i64, scratch_operands = 0 : i64, tpu.core_type = #tpu.core_type<tc>, window_params = [{transform_indices = @transform_0, window_bounds = array<i64: 8, 25>}, {pipeline_mode = #tpu.pipeline_mode<synchronous>, transform_indices = @transform_1, window_bounds = array<i64: 25, 32>}, {pipeline_mode = #tpu.pipeline_mode<synchronous>, transform_indices = @transform_2, window_bounds = array<i64: 1, 32>}, {pipeline_mode = #tpu.pipeline_mode<synchronous>, transform_indices = @transform_3, window_bounds = array<i64: 128, 32>}, {pipeline_mode = #tpu.pipeline_mode<synchronous>, transform_indices = @transform_4, window_bounds = array<i64: 4, 32>}, {pipeline_mode = #tpu.pipeline_mode<synchronous>, transform_indices = @transform_5, window_bounds = array<i64: 32, 128>}, {pipeline_mode = #tpu.pipeline_mode<synchronous>, transform_indices = @transform_6, window_bounds = array<i64: 1, 128>}, {transform_indices = @transform_7, window_bounds = array<i64: 8, 128>}]} {
    %c0 = arith.constant 0 : index
    %c0_0 = arith.constant 0 : index
    %0 = vector.load %arg1[%c0, %c0_0] : memref<8x25xf32, #tpu.memory_space<vmem>>, vector<8x25xf32>
    %1 = arith.truncf %0 : vector<8x25xf32> to vector<8x25xbf16>
    %c0_1 = arith.constant 0 : index
    %c0_2 = arith.constant 0 : index
    %2 = vector.load %arg2[%c0_1, %c0_2] : memref<25x32xbf16, #tpu.memory_space<vmem>>, vector<25x32xbf16>
    %cst = arith.constant dense<0.000000e+00> : vector<8x32xf32>
    %3 = tpu.matmul %1, %2, %cst {dimension_numbers = #tpu.dot_dimension_numbers<[1], [0], [0], [1], [0, 0, 1, 1], [], []>} : vector<8x25xbf16>, vector<25x32xbf16>, vector<8x32xf32> -> vector<8x32xf32>
    %c0_3 = arith.constant 0 : index
    %c0_4 = arith.constant 0 : index
    %4 = vector.load %arg3[%c0_3, %c0_4] : memref<1x32xf32, #tpu.memory_space<vmem>>, vector<1x32xf32>
    %5 = vector.broadcast %4 : vector<1x32xf32> to vector<8x32xf32>
    %6 = arith.addf %3, %5 : vector<8x32xf32>
    %cst_5 = arith.constant 0.000000e+00 : f32
    %7 = vector.broadcast %cst_5 : f32 to vector<8x32xf32>
    %8 = arith.maximumf %6, %7 : vector<8x32xf32>
    %c0_6 = arith.constant 0 : index
    %c0_7 = arith.constant 0 : index
    %9 = vector.load %arg4[%c0_6, %c0_7] : memref<128x32xbf16, #tpu.memory_space<vmem>>, vector<32x32xbf16>
    %c0_8 = arith.constant 0 : index
    %c0_9 = arith.constant 0 : index
    %10 = vector.load %arg5[%c0_8, %c0_9] : memref<4x32xf32, #tpu.memory_space<vmem>>, vector<1x32xf32>
    %11 = arith.truncf %8 : vector<8x32xf32> to vector<8x32xbf16>
    %cst_10 = arith.constant dense<0.000000e+00> : vector<8x32xf32>
    %12 = tpu.matmul %11, %9, %cst_10 {dimension_numbers = #tpu.dot_dimension_numbers<[1], [0], [0], [1], [0, 0, 1, 1], [], []>} : vector<8x32xbf16>, vector<32x32xbf16>, vector<8x32xf32> -> vector<8x32xf32>
    %13 = vector.broadcast %10 : vector<1x32xf32> to vector<8x32xf32>
    %14 = arith.addf %12, %13 : vector<8x32xf32>
    %cst_11 = arith.constant 0.000000e+00 : f32
    %15 = vector.broadcast %cst_11 : f32 to vector<8x32xf32>
    %16 = arith.maximumf %14, %15 : vector<8x32xf32>
    %c32 = arith.constant 32 : index
    %c0_12 = arith.constant 0 : index
    %17 = vector.load %arg4[%c32, %c0_12] : memref<128x32xbf16, #tpu.memory_space<vmem>>, vector<32x32xbf16>
    %c1 = arith.constant 1 : index
    %c0_13 = arith.constant 0 : index
    %18 = vector.load %arg5[%c1, %c0_13] : memref<4x32xf32, #tpu.memory_space<vmem>>, vector<1x32xf32>
    %19 = arith.truncf %16 : vector<8x32xf32> to vector<8x32xbf16>
    %cst_14 = arith.constant dense<0.000000e+00> : vector<8x32xf32>
    %20 = tpu.matmul %19, %17, %cst_14 {dimension_numbers = #tpu.dot_dimension_numbers<[1], [0], [0], [1], [0, 0, 1, 1], [], []>} : vector<8x32xbf16>, vector<32x32xbf16>, vector<8x32xf32> -> vector<8x32xf32>
    %21 = vector.broadcast %18 : vector<1x32xf32> to vector<8x32xf32>
    %22 = arith.addf %20, %21 : vector<8x32xf32>
    %cst_15 = arith.constant 0.000000e+00 : f32
    %23 = vector.broadcast %cst_15 : f32 to vector<8x32xf32>
    %24 = arith.maximumf %22, %23 : vector<8x32xf32>
    %c64 = arith.constant 64 : index
    %c0_16 = arith.constant 0 : index
    %25 = vector.load %arg4[%c64, %c0_16] : memref<128x32xbf16, #tpu.memory_space<vmem>>, vector<32x32xbf16>
    %c2 = arith.constant 2 : index
    %c0_17 = arith.constant 0 : index
    %26 = vector.load %arg5[%c2, %c0_17] : memref<4x32xf32, #tpu.memory_space<vmem>>, vector<1x32xf32>
    %27 = arith.truncf %24 : vector<8x32xf32> to vector<8x32xbf16>
    %cst_18 = arith.constant dense<0.000000e+00> : vector<8x32xf32>
    %28 = tpu.matmul %27, %25, %cst_18 {dimension_numbers = #tpu.dot_dimension_numbers<[1], [0], [0], [1], [0, 0, 1, 1], [], []>} : vector<8x32xbf16>, vector<32x32xbf16>, vector<8x32xf32> -> vector<8x32xf32>
    %29 = vector.broadcast %26 : vector<1x32xf32> to vector<8x32xf32>
    %30 = arith.addf %28, %29 : vector<8x32xf32>
    %cst_19 = arith.constant 0.000000e+00 : f32
    %31 = vector.broadcast %cst_19 : f32 to vector<8x32xf32>
    %32 = arith.maximumf %30, %31 : vector<8x32xf32>
    %c96 = arith.constant 96 : index
    %c0_20 = arith.constant 0 : index
    %33 = vector.load %arg4[%c96, %c0_20] : memref<128x32xbf16, #tpu.memory_space<vmem>>, vector<32x32xbf16>
    %c3 = arith.constant 3 : index
    %c0_21 = arith.constant 0 : index
    %34 = vector.load %arg5[%c3, %c0_21] : memref<4x32xf32, #tpu.memory_space<vmem>>, vector<1x32xf32>
    %35 = arith.truncf %32 : vector<8x32xf32> to vector<8x32xbf16>
    %cst_22 = arith.constant dense<0.000000e+00> : vector<8x32xf32>
    %36 = tpu.matmul %35, %33, %cst_22 {dimension_numbers = #tpu.dot_dimension_numbers<[1], [0], [0], [1], [0, 0, 1, 1], [], []>} : vector<8x32xbf16>, vector<32x32xbf16>, vector<8x32xf32> -> vector<8x32xf32>
    %37 = vector.broadcast %34 : vector<1x32xf32> to vector<8x32xf32>
    %38 = arith.addf %36, %37 : vector<8x32xf32>
    %cst_23 = arith.constant 0.000000e+00 : f32
    %39 = vector.broadcast %cst_23 : f32 to vector<8x32xf32>
    %40 = arith.maximumf %38, %39 : vector<8x32xf32>
    %41 = arith.truncf %40 : vector<8x32xf32> to vector<8x32xbf16>
    %c0_24 = arith.constant 0 : index
    %c0_25 = arith.constant 0 : index
    %42 = vector.load %arg6[%c0_24, %c0_25] : memref<32x128xbf16, #tpu.memory_space<vmem>>, vector<32x128xbf16>
    %cst_26 = arith.constant dense<0.000000e+00> : vector<8x128xf32>
    %43 = tpu.matmul %41, %42, %cst_26 {dimension_numbers = #tpu.dot_dimension_numbers<[1], [0], [0], [1], [0, 0, 1, 1], [], []>} : vector<8x32xbf16>, vector<32x128xbf16>, vector<8x128xf32> -> vector<8x128xf32>
    %c0_27 = arith.constant 0 : index
    %c0_28 = arith.constant 0 : index
    %44 = vector.load %arg7[%c0_27, %c0_28] : memref<1x128xf32, #tpu.memory_space<vmem>>, vector<1x128xf32>
    %45 = vector.broadcast %44 : vector<1x128xf32> to vector<8x128xf32>
    %46 = arith.addf %43, %45 : vector<8x128xf32>
    %47 = math.absf %46 : vector<8x128xf32>
    %cst_29 = arith.constant 9.99999974E-6 : f32
    %48 = vector.broadcast %cst_29 : f32 to vector<8x128xf32>
    %49 = arith.cmpf olt, %47, %48 : vector<8x128xf32>
    %cst_30 = arith.constant 0.000000e+00 : f32
    %50 = vector.broadcast %cst_30 : f32 to vector<8x128xf32>
    %51 = arith.select %49, %50, %46 : vector<8x128xi1>, vector<8x128xf32>
    %c0_31 = arith.constant 0 : index
    %c0_32 = arith.constant 0 : index
    %52 = vector.load %arg8[%c0_31, %c0_32] : memref<8x128xf32, #tpu.memory_space<vmem>>, vector<8x128xf32>
    tpu.vector_store %arg8[%c0_31, %c0_32], %51 {strides = array<i32>} : memref<8x128xf32, #tpu.memory_space<vmem>>, vector<8x128xf32>,
    return
  }
  func.func @transform_0(%arg0: i32) -> (i32, i32) {
    %c0_i32 = arith.constant 0 : i32
    %c0_i32_0 = arith.constant 0 : i32
    return %arg0, %c0_i32 : i32, i32
  }
  func.func @transform_1(%arg0: i32) -> (i32, i32) {
    %c0_i32 = arith.constant 0 : i32
    %c0_i32_0 = arith.constant 0 : i32
    %c0_i32_1 = arith.constant 0 : i32
    return %c0_i32, %c0_i32_0 : i32, i32
  }
  func.func @transform_2(%arg0: i32) -> (i32, i32) {
    %c0_i32 = arith.constant 0 : i32
    %c0_i32_0 = arith.constant 0 : i32
    %c0_i32_1 = arith.constant 0 : i32
    return %c0_i32, %c0_i32_0 : i32, i32
  }
  func.func @transform_3(%arg0: i32) -> (i32, i32) {
    %c0_i32 = arith.constant 0 : i32
    %c0_i32_0 = arith.constant 0 : i32
    %c0_i32_1 = arith.constant 0 : i32
    return %c0_i32, %c0_i32_0 : i32, i32
  }
  func.func @transform_4(%arg0: i32) -> (i32, i32) {
    %c0_i32 = arith.constant 0 : i32
    %c0_i32_0 = arith.constant 0 : i32
    %c0_i32_1 = arith.constant 0 : i32
    return %c0_i32, %c0_i32_0 : i32, i32
  }
  func.func @transform_5(%arg0: i32) -> (i32, i32) {
    %c0_i32 = arith.constant 0 : i32
    %c0_i32_0 = arith.constant 0 : i32
    %c0_i32_1 = arith.constant 0 : i32
    return %c0_i32, %c0_i32_0 : i32, i32
  }
  func.func @transform_6(%arg0: i32) -> (i32, i32) {
    %c0_i32 = arith.constant 0 : i32
    %c0_i32_0 = arith.constant 0 : i32
    %c0_i32_1 = arith.constant 0 : i32
    return %c0_i32, %c0_i32_0 : i32, i32
  }
  func.func @transform_7(%arg0: i32) -> (i32, i32) {
    %c0_i32 = arith.constant 0 : i32
    %c0_i32_0 = arith.constant 0 : i32
    return %arg0, %c0_i32 : i32, i32
  }
}

</mosaic_0001>

<bundles_post_ra>
// kernel: forward.1
= control target key start
LH: loop header
LB: loop body
LE: loop exit
PB: predicated region body
PF: predicated region fallthrough
CT: control target
= control target key end

     0   :  { %12 = vsyncpa [#allocation3], 0  ;;  %s810_s0 = inlined_call_operand.hbm [shape: f32[8,25], index: 0, kind: input, shape index: {}]   ;;  %s811_s1 = inlined_call_operand.hbm [shape: bf16[25,32], index: 1, kind: input, shape index: {}]   ;;  %s812_s2 = inlined_call_operand.vmem [shape: f32[1,32], index: 2, kind: input, shape index: {}]   ;;  %s813_s3 = inlined_call_operand.hbm [shape: bf16[128,32], index: 3, kind: input, shape index: {}]   ;;  %s814_s4 = inlined_call_operand.vmem [shape: f32[4,32], index: 4, kind: input, shape index: {}]   ;;  %s815_s5 = inlined_call_operand.vmem [shape: bf16[32,128], index: 5, kind: input, shape index: {}]   ;;  %s816_s6 = inlined_call_operand.vmem [shape: f32[1,128], index: 6, kind: input, shape index: {}]   ;;  %s817_s7 = inlined_call_operand.vmem [shape: f32[8,128], index: 7, kind: output, shape index: {}]  }
   0x1   :  { %13 = vsyncpa [#allocation5], 0  ;;  %s664_s24 = smov [#allocation4]   ;;  %s594_s28 = scalar_lea.hbm %s811_s1, 256 }
   0x2   :  { %s29_s25 = sshll.u32 %s664_s24, 4  ;;  %p595_p0 = scmp.ne.s32.totalorder %s811_s1, %s594_s28  ;;  %s30_s25 = int_to_ptr.vmem [resolvable:$true] %s29_s25 }
   0x3   :  { %p598_p1 = scmp.lt.u32.totalorder %s594_s28, %s811_s1 }
   0x5   :  { %p600_p2 = pnand %p598_p1, %p595_p0 }
   0x7   :  { %603 = shalt.err (!%p600_p2)
}
   0x8   :  { %s604_s10 = scalar_lea.vmem %s30_s25, 256  ;;  %p609_p4 = scmp.lt.s32.totalorder %s30_s25, %s30_s25 }
   0x9   :  { %p605_p3 = scmp.ne.s32.totalorder %s30_s25, %s604_s10  ;;  %p610_p5 = scmp.lt.s32.totalorder %s604_s10, %s604_s10 }
   0xb   :  { %p611_p6 = por %p610_p5, %p609_p4 }
   0xd   :  { %p612_p7 = pnand %p611_p6, %p605_p3 }
   0xf   :  { %615 = shalt.err (!%p612_p7)
}
  0x10   :  { %s665_s11 = smov 64   ;;  %s666_s12 = smov 4  }
  0x11   :  { %35 = dma.hbm_to_vmem [thread:$0]  %s811_s1, 256, %s30_s25, [#allocation5], %s665_s11, %s665_s11, %s666_s12  }
  0x12   :  { %s667_s15 = smov [#allocation2]   ;;  %s668_s17 = smov [#allocation6]  }
  0x13   :  { %s20_s16 = sshll.u32 %s667_s15, 4  ;;  %s43_s18 = sshll.u32 %s668_s17, 4  ;;  %s21_s16 = int_to_ptr.vmem [resolvable:$true] %s20_s16  ;;  %s44_s18 = int_to_ptr.vmem [resolvable:$true] %s43_s18 }
  0x14   :  { %s616_s21 = scalar_lea.hbm %s810_s0, 128 }
  0x15   :  { %p617_p8 = scmp.ne.s32.totalorder %s810_s0, %s616_s21  ;;  %p620_p9 = scmp.lt.u32.totalorder %s616_s21, %s810_s0 }
  0x17   :  { %p622_p10 = pnand %p620_p9, %p617_p8 }
  0x19   :  { %625 = shalt.err (!%p622_p10)
}
  0x1a   :  { %s626_s1 = scalar_lea.vmem %s21_s16, 128  ;;  %p631_p12 = scmp.lt.s32.totalorder %s21_s16, %s21_s16 }
  0x1b   :  { %p627_p11 = scmp.ne.s32.totalorder %s21_s16, %s626_s1  ;;  %p632_p13 = scmp.lt.s32.totalorder %s626_s1, %s626_s1 }
  0x1d   :  { %p633_p0 = por %p632_p13, %p631_p12 }
  0x1f   :  { %p634_p1 = pnand %p633_p0, %p627_p11 }
  0x21   :  { %637 = shalt.err (!%p634_p1)
}
  0x22   :  { %23 = dma.hbm_to_vmem [thread:$0]  %s810_s0, 128, %s21_s16, [#allocation3]  }
  0x23   :  { %s638_s30 = scalar_lea.hbm %s813_s3, 1024 }
  0x24   :  { %p639_p2 = scmp.ne.s32.totalorder %s813_s3, %s638_s30  ;;  %p642_p3 = scmp.lt.u32.totalorder %s638_s30, %s813_s3 }
  0x26   :  { %p644_p4 = pnand %p642_p3, %p639_p2 }
  0x28   :  { %647 = shalt.err (!%p644_p4)
}
  0x29   :  { %s648_s14 = scalar_lea.vmem %s44_s18, 1024  ;;  %p653_p6 = scmp.lt.s32.totalorder %s44_s18, %s44_s18 }
  0x2a   :  { %p649_p5 = scmp.ne.s32.totalorder %s44_s18, %s648_s14  ;;  %p654_p7 = scmp.lt.s32.totalorder %s648_s14, %s648_s14 }
  0x2c   :  { %p655_p8 = por %p654_p7, %p653_p6 }
  0x2e   :  { %p656_p9 = pnand %p655_p8, %p649_p5 }
  0x30   :  { %659 = shalt.err (!%p656_p9)
}
  0x31   :  { %49 = dma.hbm_to_vmem [thread:$0]  %s813_s3, 1024, %s44_s18, [#allocation5], %s665_s11, %s665_s11, %s666_s12  }
  0x32   :  { %660 = dma.done.wait [#allocation3], 128  }
  0x33   :  { %661 = vsyncadd [#allocation3], 4294967168 }
  0x34   :  { %662 = dma.done.wait [#allocation5], 1280  }
  0x35   :  { %663 = vsyncadd [#allocation5], 4294966016  ;;  %v669_v0 = vmov 0.0   ;;  %vm94_vm0 = vcmask 1043456   ;;  %vm670_vm1 = vmmov 0   ;;  %vm95_vm2 = vcmask 1044480  }
  0x36   :  { %526 = vmatprep.subr.bf16.mxu0 %v669_v0  ;;  %534 = vmatprep.subr.bf16.mxu1 %v669_v0  ;;  %v671_v1 = vmov 65535   ;;  %v582_v3 = vld [vmem:[#allocation4] sm:$0xff]   ;;  %v583_v5 = vld [vmem:[#allocation4 + $0x8] sm:$0x1f]   ;;  %v66_v6 = vld [vmem:[#allocation2] sm:$0xff]  ;;  %vm90_vm3 = vcmask 203776  }
  0x37   :  { %530 = vmatprep.mubr.msk.bf16.mxu0 %vm670_vm1, %v669_v0  ;;  %538 = vmatprep.mubr.msk.bf16.mxu1 %vm670_vm1, %v669_v0  ;;  %v96_v2 = vsel %vm94_vm0, 4294967295, %v671_v1  ;;  %v67_v8 = vpack.c.bf16 %v66_v6, %v66_v6  ;;  %v584_v9 = vld [vmem:[#allocation6] sm:$0xff]   ;;  %v585_v10 = vld [vmem:[#allocation6 + $0x8] sm:$0xff]   ;;  %v586_v11 = vld [vmem:[#allocation6 + $0x10] sm:$0xff]   ;;  %vm164_vm4 = vcmask 261120  }
  0x38   :  { %v97_v4 = vsel %vm95_vm2, %v96_v2, 0  ;;  %527 = vmatpush3.bf16.msra.mxu0 %v582_v3  ;;  %535 = vmatpush3.bf16.msra.mxu1 %v584_v9  ;;  %v484_v12 = vld [vmem:[%s812_s2] ss:$0 sm:$0xff]  ;;  %v587_v20 = vld [vmem:[#allocation6 + $0x18] sm:$0xff]   ;;  %v588_v21 = vld [vmem:[#allocation6 + $0x20] sm:$0xff]  }
  0x39   :  { %528 = vmatprep.subr.bf16.mxu0 %v669_v0  ;;  %v99_v7 = vand.u32 %v583_v5, %v97_v4  ;;  %536 = vmatprep.subr.bf16.mxu1 %v669_v0  ;;  %v488_v22 = vld [vmem:[%s814_s4] ss:$0 sm:$0xff]  ;;  %v590_v31 = vld [vmem:[#allocation6 + $0x30] sm:$0xff]   ;;  %v492_v32 = vld [vmem:[%s814_s4 + $0x1] ss:$0 sm:$0xff] }
  0x3a   :  { %v589_v30 = vld [vmem:[#allocation6 + $0x28] sm:$0xff]   ;;  %v591_v40 = vld [vmem:[#allocation6 + $0x38] sm:$0xff]   ;;  %v593_v50 = vld [vmem:[%s815_s5 + $0x8] sm:$0xff]  }
  0x3b   :  { %v592_v41 = vld [vmem:[%s815_s5] sm:$0xff]  }
  0x3c   :  { %529 = vmatpush3.bf16.msra.mxu0 %v99_v7  ;;  %537 = vmatpush3.bf16.msra.mxu1 %v585_v10  ;;  %v496_v42 = vld [vmem:[%s814_s4 + $0x2] ss:$0 sm:$0xff]  ;;  %v500_v51 = vld [vmem:[%s814_s4 + $0x3] ss:$0 sm:$0xff]  ;;  %v504_v59 = vld [vmem:[%s816_s6] ss:$0 sm:$0xff] }
  0x3d   :  { %542 = vmatprep.subr.bf16.mxu0 %v669_v0  ;;  %550 = vmatprep.subr.bf16.mxu1 %v669_v0 }
  0x3f   :  { %531 = vmatmul.mubr.msk.bf16.vlgmr.msra.gmra.mrb[0].mxu0 %vm90_vm3, %v67_v8 }
  0x40   :  { %546 = vmatprep.mubr.msk.bf16.mxu0 %vm670_vm1, %v669_v0  ;;  %543 = vmatpush3.bf16.msra.mxu0 %v586_v11 }
  0x41   :  { %544 = vmatprep.subr.bf16.mxu0 %v669_v0 }
  0x44   :  { %545 = vmatpush3.bf16.msra.mxu0 %v587_v20 }
  0x45   :  { %558 = vmatprep.subr.bf16.mxu0 %v669_v0 }
 0x112   :  { %v135_v13 = vpop.f32.mrb[0].mxu0 }
 0x113   :  { %v136_v14 = vadd.f32 %v484_v12, %v135_v13  ;;  %v532_v15 = vpop.f32.mrb[1].mxu0 }
 0x114   :  { %v138_v16 = vpop.f32.mrb[2].mxu0 }
 0x115   :  { %v141_v17 = vmax.f32 %v136_v14, 0.0  ;;  %v533_v18 = vpop.f32.mrb[3].mxu0 }
 0x117   :  { %v147_v19 = vpack.c.bf16 %v141_v17, %v141_v17 }
 0x119   :  { %539 = vmatmul.mubr.msk.bf16.vlgmr.msra.gmra.mrb[0].mxu1 %vm164_vm4, %v147_v19 }
 0x11a   :  { %554 = vmatprep.mubr.msk.bf16.mxu1 %vm670_vm1, %v669_v0  ;;  %551 = vmatpush3.bf16.msra.mxu1 %v588_v21 }
 0x11b   :  { %552 = vmatprep.subr.bf16.mxu1 %v669_v0 }
 0x11e   :  { %553 = vmatpush3.bf16.msra.mxu1 %v589_v30 }
 0x11f   :  { %566 = vmatprep.subr.bf16.mxu1 %v669_v0 }
 0x1ec   :  { %v202_v23 = vpop.f32.mrb[0].mxu1 }
 0x1ed   :  { %v203_v24 = vadd.f32 %v488_v22, %v202_v23  ;;  %v540_v25 = vpop.f32.mrb[1].mxu1 }
 0x1ee   :  { %v205_v26 = vpop.f32.mrb[2].mxu1 }
 0x1ef   :  { %v208_v27 = vmax.f32 %v203_v24, 0.0  ;;  %v541_v28 = vpop.f32.mrb[3].mxu1 }
 0x1f1   :  { %v214_v29 = vpack.c.bf16 %v208_v27, %v208_v27 }
 0x1f3   :  { %547 = vmatmul.mubr.msk.bf16.vlgmr.msra.gmra.mrb[4].mxu0 %vm164_vm4, %v214_v29 }
 0x1f4   :  { %562 = vmatprep.mubr.msk.bf16.mxu0 %vm670_vm1, %v669_v0  ;;  %559 = vmatpush3.bf16.msra.mxu0 %v590_v31 }
 0x1f5   :  { %560 = vmatprep.subr.bf16.mxu0 %v669_v0 }
 0x1f8   :  { %561 = vmatpush3.bf16.msra.mxu0 %v591_v40 }
 0x2c6   :  { %v268_v33 = vpop.f32.mrb[4].mxu0 }
 0x2c7   :  { %v269_v34 = vadd.f32 %v492_v32, %v268_v33  ;;  %v548_v35 = vpop.f32.mrb[5].mxu0 }
 0x2c8   :  { %v271_v36 = vpop.f32.mrb[6].mxu0 }
 0x2c9   :  { %v274_v37 = vmax.f32 %v269_v34, 0.0  ;;  %v549_v38 = vpop.f32.mrb[7].mxu0 }
 0x2cb   :  { %v280_v39 = vpack.c.bf16 %v274_v37, %v274_v37 }
 0x2cd   :  { %555 = vmatmul.mubr.msk.bf16.vlgmr.msra.gmra.mrb[4].mxu1 %vm164_vm4, %v280_v39 }
 0x2ce   :  { %570 = vmatprep.mubr.msk.bf16.mxu1 %vm670_vm1, %v669_v0  ;;  %567 = vmatpush3.bf16.msra.mxu1 %v592_v41 }
 0x2cf   :  { %568 = vmatprep.subr.bf16.mxu1 %v669_v0 }
 0x2d2   :  { %569 = vmatpush3.bf16.msra.mxu1 %v593_v50 }
 0x3a0   :  { %v334_v43 = vpop.f32.mrb[4].mxu1 }
 0x3a1   :  { %v335_v44 = vadd.f32 %v496_v42, %v334_v43  ;;  %v556_v45 = vpop.f32.mrb[5].mxu1 }
 0x3a2   :  { %v337_v46 = vpop.f32.mrb[6].mxu1 }
 0x3a3   :  { %v340_v47 = vmax.f32 %v335_v44, 0.0  ;;  %v557_v48 = vpop.f32.mrb[7].mxu1 }
 0x3a5   :  { %v346_v49 = vpack.c.bf16 %v340_v47, %v340_v47 }
 0x3a7   :  { %563 = vmatmul.mubr.msk.bf16.vlgmr.msra.gmra.mrb[8].mxu0 %vm164_vm4, %v346_v49 }
 0x47a   :  { %v400_v52 = vpop.f32.mrb[8].mxu0 }
 0x47b   :  { %v401_v53 = vadd.f32 %v500_v51, %v400_v52  ;;  %v564_v54 = vpop.f32.mrb[9].mxu0 }
 0x47c   :  { %v403_v55 = vpop.f32.mrb[10].mxu0 }
 0x47d   :  { %v406_v56 = vmax.f32 %v401_v53, 0.0  ;;  %v565_v57 = vpop.f32.mrb[11].mxu0 }
 0x47f   :  { %v407_v58 = vpack.c.bf16 %v406_v56, %v406_v56 }
 0x481   :  { %571 = vmatmul.mubr.msk.bf16.vlgmr.msra.gmra.mrb[8].mxu1 %vm164_vm4, %v407_v58 }
 0x554   :  { %v468_v60 = vpop.f32.mrb[8].mxu1 }
 0x555   :  { %v469_v61 = vadd.f32 %v504_v59, %v468_v60  ;;  %v572_v62 = vpop.f32.mrb[9].mxu1 }
 0x556   :  { %v471_v63 = vpop.f32.mrb[10].mxu1 }
 0x557   :  { %v474_v0 = vand.u32 2147483647, %v469_v61  ;;  %v573_v1 = vpop.f32.mrb[11].mxu1 }
 0x559   :  { %vm475_vm5 = vcmp.lt.f32.partialorder %v474_v0, 1e-05 }
 0x55a   :  { %v476_v2 = vsel %vm475_vm5, 0.0, %v469_v61 }
 0x55b   :  { %477 = vst [vmem:[%s817_s7] sm:$0xff] %v476_v2 }
 0x55c   :  { %482 = vsyncpa [#allocation3], 1 }
 0x55d   :  { %483 = vsyncpa [#allocation5], 1 }

</bundles_post_ra>
